<compile_context>
chip_gen: v7x
topology: tpu7x:2x2x1
jax: 0.10.0
libtpu: 0.0.40
codegen_flags: <defaults>
</compile_context>

<pallas_src>
import jax
import jax.numpy as jnp
from jax import lax
from jax.experimental import pallas as pl
from jax.experimental.pallas import tpu as pltpu


def actor_kernel(x_ref, w1_ref, b1_ref, w2_ref, b2_ref, w3_ref, b3_ref, o_ref):
    x = x_ref[...]

    # linear1 + relu
    h1 = jnp.dot(x, w1_ref[...], preferred_element_type=jnp.float32) + b1_ref[...]
    h1 = jnp.maximum(h1, 0.0)

    # linear2 + relu
    h2 = jnp.dot(h1, w2_ref[...], preferred_element_type=jnp.float32) + b2_ref[...]
    h2 = jnp.maximum(h2, 0.0)

    # head (out dim padded to 128 lanes in the wrapper -> lane-dense store)
    y = jnp.dot(h2, w3_ref[...], preferred_element_type=jnp.float32) + b3_ref[...]

    # column 0: tanh(0.6*y) ; column 1: sigmoid(y) == 0.5*(1 + tanh(0.5*y))
    # Only one tanh sweep over the tile (single EUP transcendental family).
    col = lax.broadcasted_iota(jnp.int32, y.shape, dimension=1)
    is_steer = col == 0
    t = jnp.tanh(jnp.where(is_steer, 0.6 * y, 0.5 * y))
    out = jnp.where(is_steer, t, 0.5 * (1.0 + t))
    o_ref[...] = out.astype(o_ref.dtype)


def _round_up(x, m):
    return (x + m - 1) // m * m


def actor_forward(state, params, *, tb=256):
    """state: (B, input_size) f32.  Returns (B, output_size) f32."""
    (w1t, b1, w2t, b2, w3t, b3) = params
    B, in_dim = state.shape
    hidden = w1t.shape[1]
    out_size = w3t.shape[1]

    # Lane-dense head: pad head weight/bias out to a multiple of 128 lanes.
    out_pad = _round_up(max(out_size, 128), 128)
    w3p = jnp.pad(w3t, ((0, 0), (0, out_pad - out_size)))
    b3p = jnp.pad(b3, ((0, 0), (0, out_pad - out_size)))

    # Batch tiling: TB rows per grid step (multiple of 8 sublanes).
    TB = min(tb, _round_up(B, 8))
    Bp = _round_up(B, TB)
    if Bp != B:
        state = jnp.pad(state, ((0, Bp - B), (0, 0)))

    grid = (Bp // TB,)
    out = pl.pallas_call(
        actor_kernel,
        out_shape=jax.ShapeDtypeStruct((Bp, out_pad), jnp.float32),
        grid=grid,
        in_specs=[
            # state: tiled along batch (double-buffered by the pipeline)
            pl.BlockSpec((TB, in_dim), lambda i: (i, 0)),
            # params: index_map ignores the grid index -> VMEM-resident
            pl.BlockSpec((in_dim, hidden), lambda i: (0, 0)),
            pl.BlockSpec((1, hidden), lambda i: (0, 0)),
            pl.BlockSpec((hidden, hidden), lambda i: (0, 0)),
            pl.BlockSpec((1, hidden), lambda i: (0, 0)),
            pl.BlockSpec((hidden, out_pad), lambda i: (0, 0)),
            pl.BlockSpec((1, out_pad), lambda i: (0, 0)),
        ],
        out_specs=pl.BlockSpec((TB, out_pad), lambda i: (i, 0)),
        compiler_params=pltpu.CompilerParams(
            dimension_semantics=("parallel",)),
    )(state, w1t, b1, w2t, b2, w3p, b3p)

    return out[:B, :out_size]


def init_actor_params(key, input_size, hidden_size, output_size):
    """Deterministic init mimicking nn.Linear's uniform(-1/sqrt(fan_in), +)."""
    ks = jax.random.split(key, 6)

    def linear(kw, kb, fan_in, fan_out):
        bound = 1.0 / jnp.sqrt(fan_in)
        w_t = jax.random.uniform(kw, (fan_in, fan_out), jnp.float32, -bound, bound)
        b = jax.random.uniform(kb, (1, fan_out), jnp.float32, -bound, bound)
        return w_t, b

    w1t, b1 = linear(ks[0], ks[1], input_size, hidden_size)
    w2t, b2 = linear(ks[2], ks[3], hidden_size, hidden_size)
    w3t, b3 = linear(ks[4], ks[5], hidden_size, output_size)
    return (w1t, b1, w2t, b2, w3t, b3)


def actor_ref(state, params):
    """Pure-JAX reference for correctness check."""
    (w1t, b1, w2t, b2, w3t, b3) = params
    h1 = jnp.maximum(state @ w1t + b1, 0.0)
    h2 = jnp.maximum(h1 @ w2t + b2, 0.0)
    y = h2 @ w3t + b3
    steer = jnp.tanh(0.6 * y[:, 0:1])
    accel = jax.nn.sigmoid(y[:, 1:2])
    return jnp.concatenate([steer, accel], axis=1)


if __name__ == "__main__":
    INPUT_SIZE = 16     # state dim
    HIDDEN_SIZE = 32
    OUTPUT_SIZE = 2     # [steer, accel_brake]

    key = jax.random.PRNGKey(0)
    k_state, k_state2, k_params = jax.random.split(key, 3)
    params = init_actor_params(k_params, INPUT_SIZE, HIDDEN_SIZE, OUTPUT_SIZE)

    # Small batch (single grid step, TB rounded to 8 sublanes).
    B = 8
    state = jax.random.normal(k_state, (B, INPUT_SIZE), jnp.float32)
    out = jax.block_until_ready(actor_forward(state, params))
    ref = actor_ref(state, params)
    assert out.shape == (B, OUTPUT_SIZE)
    assert jnp.allclose(out, ref, atol=1e-5, rtol=1e-5), "mismatch vs reference (B=8)"

    # Larger, non-multiple batch exercises the multi-step grid + padding path.
    B2 = 300
    state2 = jax.random.normal(k_state2, (B2, INPUT_SIZE), jnp.float32)
    out2 = jax.block_until_ready(actor_forward(state2, params, tb=256))
    ref2 = actor_ref(state2, params)
    assert out2.shape == (B2, OUTPUT_SIZE)
    assert jnp.allclose(out2, ref2, atol=1e-5, rtol=1e-5), "mismatch vs reference (B=300)"

    print("KERNEL_OK")
</pallas_src>

<mosaic_0001>
module attributes {stable_mosaic.version = 11 : i64} {
  func.func @actor_kernel(%arg0: i32, %arg1: memref<8x16xf32, #tpu.memory_space<vmem>>, %arg2: memref<16x32xf32, #tpu.memory_space<vmem>>, %arg3: memref<1x32xf32, #tpu.memory_space<vmem>>, %arg4: memref<32x32xf32, #tpu.memory_space<vmem>>, %arg5: memref<1x32xf32, #tpu.memory_space<vmem>>, %arg6: memref<32x128xf32, #tpu.memory_space<vmem>>, %arg7: memref<1x128xf32, #tpu.memory_space<vmem>>, %arg8: memref<8x128xf32, #tpu.memory_space<vmem>>) attributes {dimension_semantics = [#tpu.dimension_semantics<parallel>], iteration_bounds = array<i64: 1>, scalar_prefetch = 0 : i64, scratch_operands = 0 : i64, tpu.core_type = #tpu.core_type<tc>, window_params = [{transform_indices = @transform_0, window_bounds = array<i64: 8, 16>}, {pipeline_mode = #tpu.pipeline_mode<synchronous>, transform_indices = @transform_1, window_bounds = array<i64: 16, 32>}, {pipeline_mode = #tpu.pipeline_mode<synchronous>, transform_indices = @transform_2, window_bounds = array<i64: 1, 32>}, {pipeline_mode = #tpu.pipeline_mode<synchronous>, transform_indices = @transform_3, window_bounds = array<i64: 32, 32>}, {pipeline_mode = #tpu.pipeline_mode<synchronous>, transform_indices = @transform_4, window_bounds = array<i64: 1, 32>}, {pipeline_mode = #tpu.pipeline_mode<synchronous>, transform_indices = @transform_5, window_bounds = array<i64: 32, 128>}, {pipeline_mode = #tpu.pipeline_mode<synchronous>, transform_indices = @transform_6, window_bounds = array<i64: 1, 128>}, {transform_indices = @transform_7, window_bounds = array<i64: 8, 128>}]} {
    %c0 = arith.constant 0 : index
    %c0_0 = arith.constant 0 : index
    %0 = vector.load %arg1[%c0, %c0_0] : memref<8x16xf32, #tpu.memory_space<vmem>>, vector<8x16xf32>
    %c0_1 = arith.constant 0 : index
    %c0_2 = arith.constant 0 : index
    %1 = vector.load %arg2[%c0_1, %c0_2] : memref<16x32xf32, #tpu.memory_space<vmem>>, vector<16x32xf32>
    %cst = arith.constant dense<0.000000e+00> : vector<8x32xf32>
    %2 = tpu.matmul %0, %1, %cst {dimension_numbers = #tpu.dot_dimension_numbers<[1], [0], [0], [1], [0, 0, 1, 1], [], []>} : vector<8x16xf32>, vector<16x32xf32>, vector<8x32xf32> -> vector<8x32xf32>
    %c0_3 = arith.constant 0 : index
    %c0_4 = arith.constant 0 : index
    %3 = vector.load %arg3[%c0_3, %c0_4] : memref<1x32xf32, #tpu.memory_space<vmem>>, vector<1x32xf32>
    %4 = vector.broadcast %3 : vector<1x32xf32> to vector<8x32xf32>
    %5 = arith.addf %2, %4 : vector<8x32xf32>
    %cst_5 = arith.constant 0.000000e+00 : f32
    %6 = vector.broadcast %cst_5 : f32 to vector<8x32xf32>
    %7 = arith.maximumf %5, %6 : vector<8x32xf32>
    %c0_6 = arith.constant 0 : index
    %c0_7 = arith.constant 0 : index
    %8 = vector.load %arg4[%c0_6, %c0_7] : memref<32x32xf32, #tpu.memory_space<vmem>>, vector<32x32xf32>
    %cst_8 = arith.constant dense<0.000000e+00> : vector<8x32xf32>
    %9 = tpu.matmul %7, %8, %cst_8 {dimension_numbers = #tpu.dot_dimension_numbers<[1], [0], [0], [1], [0, 0, 1, 1], [], []>} : vector<8x32xf32>, vector<32x32xf32>, vector<8x32xf32> -> vector<8x32xf32>
    %c0_9 = arith.constant 0 : index
    %c0_10 = arith.constant 0 : index
    %10 = vector.load %arg5[%c0_9, %c0_10] : memref<1x32xf32, #tpu.memory_space<vmem>>, vector<1x32xf32>
    %11 = vector.broadcast %10 : vector<1x32xf32> to vector<8x32xf32>
    %12 = arith.addf %9, %11 : vector<8x32xf32>
    %cst_11 = arith.constant 0.000000e+00 : f32
    %13 = vector.broadcast %cst_11 : f32 to vector<8x32xf32>
    %14 = arith.maximumf %12, %13 : vector<8x32xf32>
    %c0_12 = arith.constant 0 : index
    %c0_13 = arith.constant 0 : index
    %15 = vector.load %arg6[%c0_12, %c0_13] : memref<32x128xf32, #tpu.memory_space<vmem>>, vector<32x128xf32>
    %cst_14 = arith.constant dense<0.000000e+00> : vector<8x128xf32>
    %16 = tpu.matmul %14, %15, %cst_14 {dimension_numbers = #tpu.dot_dimension_numbers<[1], [0], [0], [1], [0, 0, 1, 1], [], []>} : vector<8x32xf32>, vector<32x128xf32>, vector<8x128xf32> -> vector<8x128xf32>
    %c0_15 = arith.constant 0 : index
    %c0_16 = arith.constant 0 : index
    %17 = vector.load %arg7[%c0_15, %c0_16] : memref<1x128xf32, #tpu.memory_space<vmem>>, vector<1x128xf32>
    %18 = vector.broadcast %17 : vector<1x128xf32> to vector<8x128xf32>
    %19 = arith.addf %16, %18 : vector<8x128xf32>
    %20 = tpu.iota {dimensions = array<i32: 1>} : vector<8x128xi32>
    %c0_i32 = arith.constant 0 : i32
    %21 = vector.broadcast %c0_i32 : i32 to vector<8x128xi32>
    %22 = arith.cmpi eq, %20, %21 : vector<8x128xi32>
    %cst_17 = arith.constant 6.000000e-01 : f32
    %23 = vector.broadcast %cst_17 : f32 to vector<8x128xf32>
    %24 = arith.mulf %23, %19 : vector<8x128xf32>
    %cst_18 = arith.constant 5.000000e-01 : f32
    %25 = vector.broadcast %cst_18 : f32 to vector<8x128xf32>
    %26 = arith.mulf %25, %19 : vector<8x128xf32>
    %27 = arith.select %22, %24, %26 : vector<8x128xi1>, vector<8x128xf32>
    %28 = math.tanh %27 : vector<8x128xf32>
    %cst_19 = arith.constant 1.000000e+00 : f32
    %29 = vector.broadcast %cst_19 : f32 to vector<8x128xf32>
    %30 = arith.addf %29, %28 : vector<8x128xf32>
    %cst_20 = arith.constant 5.000000e-01 : f32
    %31 = vector.broadcast %cst_20 : f32 to vector<8x128xf32>
    %32 = arith.mulf %31, %30 : vector<8x128xf32>
    %33 = arith.select %22, %28, %32 : vector<8x128xi1>, vector<8x128xf32>
    %c0_21 = arith.constant 0 : index
    %c0_22 = arith.constant 0 : index
    %34 = vector.load %arg8[%c0_21, %c0_22] : memref<8x128xf32, #tpu.memory_space<vmem>>, vector<8x128xf32>
    tpu.vector_store %arg8[%c0_21, %c0_22], %33 {strides = array<i32>} : memref<8x128xf32, #tpu.memory_space<vmem>>, vector<8x128xf32>,
    return
  }
  func.func @transform_0(%arg0: i32) -> (i32, i32) {
    %c0_i32 = arith.constant 0 : i32
    %c0_i32_0 = arith.constant 0 : i32
    return %arg0, %c0_i32 : i32, i32
  }
  func.func @transform_1(%arg0: i32) -> (i32, i32) {
    %c0_i32 = arith.constant 0 : i32
    %c0_i32_0 = arith.constant 0 : i32
    %c0_i32_1 = arith.constant 0 : i32
    return %c0_i32, %c0_i32_0 : i32, i32
  }
  func.func @transform_2(%arg0: i32) -> (i32, i32) {
    %c0_i32 = arith.constant 0 : i32
    %c0_i32_0 = arith.constant 0 : i32
    %c0_i32_1 = arith.constant 0 : i32
    return %c0_i32, %c0_i32_0 : i32, i32
  }
  func.func @transform_3(%arg0: i32) -> (i32, i32) {
    %c0_i32 = arith.constant 0 : i32
    %c0_i32_0 = arith.constant 0 : i32
    %c0_i32_1 = arith.constant 0 : i32
    return %c0_i32, %c0_i32_0 : i32, i32
  }
  func.func @transform_4(%arg0: i32) -> (i32, i32) {
    %c0_i32 = arith.constant 0 : i32
    %c0_i32_0 = arith.constant 0 : i32
    %c0_i32_1 = arith.constant 0 : i32
    return %c0_i32, %c0_i32_0 : i32, i32
  }
  func.func @transform_5(%arg0: i32) -> (i32, i32) {
    %c0_i32 = arith.constant 0 : i32
    %c0_i32_0 = arith.constant 0 : i32
    %c0_i32_1 = arith.constant 0 : i32
    return %c0_i32, %c0_i32_0 : i32, i32
  }
  func.func @transform_6(%arg0: i32) -> (i32, i32) {
    %c0_i32 = arith.constant 0 : i32
    %c0_i32_0 = arith.constant 0 : i32
    %c0_i32_1 = arith.constant 0 : i32
    return %c0_i32, %c0_i32_0 : i32, i32
  }
  func.func @transform_7(%arg0: i32) -> (i32, i32) {
    %c0_i32 = arith.constant 0 : i32
    %c0_i32_0 = arith.constant 0 : i32
    return %arg0, %c0_i32 : i32, i32
  }
}

</mosaic_0001>

<bundles_post_ra>
// kernel: tpu_custom_call.1
= control target key start
LH: loop header
LB: loop body
LE: loop exit
PB: predicated region body
PF: predicated region fallthrough
CT: control target
= control target key end

     0   :  { %12 = vsyncpa [#allocation3], 0  ;;  %s687_s0 = inlined_call_operand.hbm [shape: f32[8,16], index: 0, kind: input, shape index: {}]   ;;  %s688_s1 = inlined_call_operand.hbm [shape: f32[16,32], index: 1, kind: input, shape index: {}]   ;;  %s689_s2 = inlined_call_operand.vmem [shape: f32[1,32], index: 2, kind: input, shape index: {}]   ;;  %s690_s3 = inlined_call_operand.hbm [shape: f32[32,32], index: 3, kind: input, shape index: {}]   ;;  %s691_s4 = inlined_call_operand.vmem [shape: f32[1,32], index: 4, kind: input, shape index: {}]   ;;  %s692_s5 = inlined_call_operand.hbm [shape: f32[32,128], index: 5, kind: input, shape index: {}]   ;;  %s693_s6 = inlined_call_operand.vmem [shape: f32[1,128], index: 6, kind: input, shape index: {}]   ;;  %s694_s7 = inlined_call_operand.hbm [shape: f32[8,128], index: 7, kind: output, shape index: {}]  }
   0x1   :  { %13 = vsyncpa [#allocation6], 0 }
   0x2   :  { %14 = vsyncpa [#allocation9], 0 }
   0x3   :  { %15 = vsyncpa [#allocation4], 0  ;;  %s556_s24 = smov [#allocation5]   ;;  %s438_s28 = scalar_lea.hbm %s688_s1, 256 }
   0x4   :  { %s31_s25 = sshll.u32 %s556_s24, 4  ;;  %p439_p0 = scmp.ne.s32.totalorder %s688_s1, %s438_s28  ;;  %s32_s25 = int_to_ptr.vmem [resolvable:$true] %s31_s25 }
   0x5   :  { %p442_p1 = scmp.lt.u32.totalorder %s438_s28, %s688_s1 }
   0x7   :  { %p444_p2 = pnand %p442_p1, %p439_p0 }
   0x9   :  { %447 = shalt.err (!%p444_p2)
}
   0xa   :  { %s448_s10 = scalar_lea.vmem %s32_s25, 256  ;;  %p453_p4 = scmp.lt.s32.totalorder %s32_s25, %s32_s25 }
   0xb   :  { %p449_p3 = scmp.ne.s32.totalorder %s32_s25, %s448_s10  ;;  %p454_p5 = scmp.lt.s32.totalorder %s448_s10, %s448_s10 }
   0xd   :  { %p455_p6 = por %p454_p5, %p453_p4 }
   0xf   :  { %p456_p7 = pnand %p455_p6, %p449_p3 }
  0x11   :  { %459 = shalt.err (!%p456_p7)
}
  0x12   :  { %s557_s11 = smov 128   ;;  %s558_s12 = smov 8  }
  0x13   :  { %37 = dma.hbm_to_vmem [thread:$0]  %s688_s1, 256, %s32_s25, [#allocation6], %s557_s11, %s557_s11, %s558_s12  }
  0x14   :  { %s559_s15 = smov [#allocation2]   ;;  %s560_s17 = smov [#allocation7]  }
  0x15   :  { %s22_s16 = sshll.u32 %s559_s15, 4  ;;  %s45_s18 = sshll.u32 %s560_s17, 4  ;;  %s23_s16 = int_to_ptr.vmem [resolvable:$true] %s22_s16  ;;  %s46_s18 = int_to_ptr.vmem [resolvable:$true] %s45_s18 }
  0x16   :  { %s460_s21 = scalar_lea.hbm %s687_s0, 128 }
  0x17   :  { %p461_p8 = scmp.ne.s32.totalorder %s687_s0, %s460_s21  ;;  %p464_p9 = scmp.lt.u32.totalorder %s460_s21, %s687_s0 }
  0x19   :  { %p466_p10 = pnand %p464_p9, %p461_p8 }
  0x1b   :  { %469 = shalt.err (!%p466_p10)
}
  0x1c   :  { %s470_s1 = scalar_lea.vmem %s23_s16, 128  ;;  %p475_p12 = scmp.lt.s32.totalorder %s23_s16, %s23_s16 }
  0x1d   :  { %p471_p11 = scmp.ne.s32.totalorder %s23_s16, %s470_s1  ;;  %p476_p13 = scmp.lt.s32.totalorder %s470_s1, %s470_s1 }
  0x1f   :  { %p477_p0 = por %p476_p13, %p475_p12 }
  0x21   :  { %p478_p1 = pnand %p477_p0, %p471_p11 }
  0x23   :  { %481 = shalt.err (!%p478_p1)
}
  0x24   :  { %25 = dma.hbm_to_vmem [thread:$0]  %s687_s0, 128, %s23_s16, [#allocation3]  }
  0x25   :  { %s482_s30 = scalar_lea.hbm %s690_s3, 512 }
  0x26   :  { %p483_p2 = scmp.ne.s32.totalorder %s690_s3, %s482_s30  ;;  %p486_p3 = scmp.lt.u32.totalorder %s482_s30, %s690_s3 }
  0x28   :  { %p488_p4 = pnand %p486_p3, %p483_p2 }
  0x2a   :  { %491 = shalt.err (!%p488_p4)
}
  0x2b   :  { %s492_s14 = scalar_lea.vmem %s46_s18, 512  ;;  %p497_p6 = scmp.lt.s32.totalorder %s46_s18, %s46_s18 }
  0x2c   :  { %p493_p5 = scmp.ne.s32.totalorder %s46_s18, %s492_s14  ;;  %p498_p7 = scmp.lt.s32.totalorder %s492_s14, %s492_s14 }
  0x2e   :  { %p499_p8 = por %p498_p7, %p497_p6 }
  0x30   :  { %p500_p9 = pnand %p499_p8, %p493_p5 }
  0x32   :  { %503 = shalt.err (!%p500_p9)
}
  0x33   :  { %51 = dma.hbm_to_vmem [thread:$0]  %s690_s3, 512, %s46_s18, [#allocation6], %s557_s11, %s557_s11, %s558_s12  }
  0x34   :  { %s561_s16 = smov [#allocation8]   ;;  %s504_s21 = scalar_lea.hbm %s692_s5, 512 }
  0x35   :  { %s59_s17 = sshll.u32 %s561_s16, 4  ;;  %p505_p10 = scmp.ne.s32.totalorder %s692_s5, %s504_s21  ;;  %s60_s17 = int_to_ptr.vmem [resolvable:$true] %s59_s17 }
  0x36   :  { %p508_p11 = scmp.lt.u32.totalorder %s504_s21, %s692_s5 }
  0x38   :  { %p510_p12 = pnand %p508_p11, %p505_p10 }
  0x3a   :  { %513 = shalt.err (!%p510_p12)
}
  0x3b   :  { %s514_s1 = scalar_lea.vmem %s60_s17, 512  ;;  %p519_p0 = scmp.lt.s32.totalorder %s60_s17, %s60_s17 }
  0x3c   :  { %p515_p13 = scmp.ne.s32.totalorder %s60_s17, %s514_s1  ;;  %p520_p1 = scmp.lt.s32.totalorder %s514_s1, %s514_s1 }
  0x3e   :  { %p521_p2 = por %p520_p1, %p519_p0 }
  0x40   :  { %p522_p3 = pnand %p521_p2, %p515_p13 }
  0x42   :  { %525 = shalt.err (!%p522_p3)
}
  0x43   :  { %65 = dma.hbm_to_vmem [thread:$0]  %s692_s5, 512, %s60_s17, [#allocation9], %s557_s11, %s557_s11, %s558_s12  }
  0x44   :  { %548 = dma.done.wait [#allocation3], 128  }
  0x45   :  { %549 = vsyncadd [#allocation3], 4294967168 }
  0x46   :  { %550 = dma.done.wait [#allocation6], 768  }
  0x47   :  { %551 = vsyncadd [#allocation6], 4294966528 }
  0x48   :  { %552 = dma.done.wait [#allocation9], 512  }
  0x49   :  { %553 = vsyncadd [#allocation9], 4294966784  ;;  %v562_v0 = vmov 0.0|0.0   ;;  %vm563_vm0 = vmmov 0   ;;  %v564_v1 = vmov 0.0   ;;  %v81_v2 = vld [vmem:[#allocation5] sm:$0xff]  ;;  %v335_v28 = vlaneseq }
  0x4a   :  { %411 = vmatprep.subr.bf16.mxu0 %v562_v0  ;;  %386 = vmatprep.mubr.msk.f32.mxu0 %vm563_vm0, %v564_v1  ;;  %v82_v3 = vld [vmem:[#allocation5 + $0x8] sm:$0xff]  ;;  %v165_v5 = vld [vmem:[#allocation7] sm:$0xff]  ;;  %v166_v6 = vld [vmem:[#allocation7 + $0x8] sm:$0xff]  ;;  %vm90_vm1 = vcmask 130048   ;;  %vm176_vm2 = vcmask 261120  }
  0x4b   :  { %414 = vmatprep.subr.bf16.mxu1 %v562_v0  ;;  %397 = vmatprep.mubr.msk.f32.mxu1 %vm563_vm0, %v564_v1  ;;  %v412_v4 = vpack.c.bf16 %v82_v3, %v81_v2  ;;  %v415_v7 = vpack.c.bf16 %v166_v6, %v165_v5  ;;  %v80_v8 = vld [vmem:[#allocation2] sm:$0xff]  ;;  %v167_v9 = vld [vmem:[#allocation7 + $0x10] sm:$0xff]  ;;  %v168_v10 = vld [vmem:[#allocation7 + $0x18] sm:$0xff]  ;;  %v336_v30 = vand.u32 127, %v335_v28 }
  0x4c   :  { %v418_v11 = vpack.c.bf16 %v168_v10, %v167_v9  ;;  %v251_v12 = vld [vmem:[#allocation8] sm:$0xff]  ;;  %v252_v13 = vld [vmem:[#allocation8 + $0x8] sm:$0xff]  ;;  %v253_v20 = vld [vmem:[#allocation8 + $0x10] sm:$0xff] }
  0x4d   :  { %413 = vmatpush3.bf16.msra.mxu0 %v412_v4  ;;  %416 = vmatpush3.bf16.msra.mxu1 %v415_v7  ;;  %v421_v14 = vpack.c.bf16 %v252_v13, %v251_v12  ;;  %v363_v15 = vld [vmem:[%s689_s2] ss:$0 sm:$0xff]  ;;  %v254_v21 = vld [vmem:[#allocation8 + $0x18] sm:$0xff]  ;;  %vm337_vm3 = vcmp.eq.s32.totalorder %v336_v30, 0 }
  0x4e   :  { %420 = vmatprep.subr.bf16.mxu0 %v562_v0  ;;  %417 = vmatprep.subr.bf16.mxu1 %v562_v0  ;;  %v424_v22 = vpack.c.bf16 %v254_v21, %v253_v20  ;;  %v365_v23 = vld [vmem:[%s691_s4] ss:$0 sm:$0xff]  ;;  %s565_s4 = smov [#allocation10]  }
  0x4f   :  { %v367_v29 = vld [vmem:[%s693_s6] ss:$0 sm:$0xff]  ;;  %s352_s28 = sshll.u32 %s565_s4, 4  ;;  %s353_s28 = int_to_ptr.vmem [resolvable:$true] %s352_s28 }
  0x50   :  { %387 = vmatmul.mubr.msk.f32.vlgmr.msra.gmra.mrb[0].mxu0 %vm90_vm1, %v80_v8  ;;  %s526_s29 = scalar_lea.vmem %s353_s28, 128  ;;  %p531_p5 = scmp.lt.s32.totalorder %s353_s28, %s353_s28 }
  0x51   :  { %408 = vmatprep.mubr.msk.f32.mxu0 %vm563_vm0, %v564_v1  ;;  %419 = vmatpush3.bf16.msra.mxu1 %v418_v11  ;;  %p527_p4 = scmp.ne.s32.totalorder %s353_s28, %s526_s29  ;;  %p532_p6 = scmp.lt.s32.totalorder %s526_s29, %s526_s29 }
  0x52   :  { %422 = vmatpush3.bf16.msra.mxu0 %v421_v14 }
  0x53   :  { %423 = vmatprep.subr.bf16.mxu0 %v562_v0  ;;  %p533_p7 = por %p532_p6, %p531_p5 }
  0x55   :  { %p534_p8 = pnand %p533_p7, %p527_p4 }
  0x56   :  { %425 = vmatpush3.bf16.msra.mxu0 %v424_v22 }
 0x123   :  { %v160_v16 = vpop.f32.mrb[0].mxu0 }
 0x124   :  { %v161_v17 = vadd.f32 %v363_v15, %v160_v16  ;;  %v388_v18 = vpop.f32.mrb[1].mxu0 }
 0x126   :  { %v164_v19 = vmax.f32 %v161_v17, 0.0 }
 0x128   :  { %398 = vmatmul.mubr.msk.f32.vlgmr.msra.gmra.mrb[0].mxu1 %vm176_vm2, %v164_v19 }
 0x1fb   :  { %v246_v24 = vpop.f32.mrb[0].mxu1 }
 0x1fc   :  { %v247_v25 = vadd.f32 %v365_v23, %v246_v24  ;;  %v399_v26 = vpop.f32.mrb[1].mxu1 }
 0x1fe   :  { %v250_v27 = vmax.f32 %v247_v25, 0.0 }
 0x200   :  { %409 = vmatmul.mubr.msk.f32.vlgmr.msra.gmra.mrb[2].mxu0 %vm176_vm2, %v250_v27 }
 0x2d3   :  { %v331_v31 = vpop.f32.mrb[2].mxu0 }
 0x2d4   :  { %v332_v32 = vadd.f32 %v367_v29, %v331_v31  ;;  %v410_v33 = vpop.f32.mrb[3].mxu0 }
 0x2d6   :  { %v338_v34 = vmul.f32 0.6, %v332_v32  ;;  %v339_v35 = vmul.f32 0.5, %v332_v32 }
 0x2d8   :  { %v340_v36 = vsel %vm337_vm3, %v338_v34, %v339_v35 }
 0x2d9   :  { %436 = vtanh.f32 %v340_v36 }
 0x2e3   :  { %v437_v37 = vpop.eup %436 }
 0x2e4   :  { %v342_v38 = vadd.f32 1.0, %v437_v37 }
 0x2e6   :  { %v343_v39 = vmul.f32 0.5, %v342_v38 }
 0x2e8   :  { %v344_v40 = vsel %vm337_vm3, %v437_v37, %v343_v39 }
 0x2e9   :  { %345 = vst [vmem:[#allocation10] sm:$0xff] %v344_v40 }
 0x2ea   :  { %537 = shalt.err (!%p534_p8)
}
 0x2eb   :  { %s538_s8 = scalar_lea.hbm %s694_s7, 128 }
 0x2ec   :  { %p539_p9 = scmp.ne.s32.totalorder %s694_s7, %s538_s8  ;;  %p542_p10 = scmp.lt.u32.totalorder %s538_s8, %s694_s7 }
 0x2ee   :  { %p544_p11 = pnand %p542_p10, %p539_p9 }
 0x2f0   :  { %547 = shalt.err (!%p544_p11)
}
 0x2f1   :  { %355 = dma.vmem_to_hbm [thread:$0]  %s353_s28, 128, %s694_s7, [#allocation4]  }
 0x2f2   :  { %554 = dma.done.wait [#allocation4], 128  }
 0x2f3   :  { %555 = vsyncadd [#allocation4], 4294967168 }
 0x2f4   :  { %359 = vsyncpa [#allocation3], 1 }
 0x2f5   :  { %360 = vsyncpa [#allocation6], 1 }
 0x2f6   :  { %361 = vsyncpa [#allocation9], 1 }
 0x2f7   :  { %362 = vsyncpa [#allocation4], 1 }

</bundles_post_ra>
